<compile_context>
chip_gen: v7x
topology: tpu7x:2x2x1
jax: 0.10.0
libtpu: 0.0.40
codegen_flags: <defaults>
</compile_context>

<pallas_src>
import functools

import jax
import jax.numpy as jnp
from jax import lax
from jax.experimental import pallas as pl
from jax.experimental.pallas import tpu as pltpu


# ---------------------------------------------------------------------------
# Kernel 1: fused QKV projection (single wide GEMM, run once per seq tile).
# ---------------------------------------------------------------------------
def _qkv_proj_kernel(x_ref, w_ref, b_ref, q_ref, k_ref, v_ref, *, scale, dp):
    cdt = w_ref.dtype                         # MXU compute dtype (bf16 for f32 in)
    x = x_ref[...].astype(cdt)                # (tm, D)
    # One wide GEMM: (tm, D) @ (D, 3*dp) with f32 accumulation, f32 bias add.
    y = jnp.dot(x, w_ref[...], preferred_element_type=jnp.float32) + b_ref[...]
    # Fold 1/sqrt(D) into q once here (S*D work instead of S*S later).
    q_ref[...] = (y[:, 0:dp] * scale).astype(q_ref.dtype)
    k_ref[...] = y[:, dp:2 * dp].astype(k_ref.dtype)
    v_ref[...] = y[:, 2 * dp:3 * dp].astype(v_ref.dtype)


# ---------------------------------------------------------------------------
# Kernel 2: flash attention over pre-projected q/k/v (online softmax).
# ---------------------------------------------------------------------------
def _flash_attn_kernel(q_ref, k_ref, v_ref, o_ref, m_scr, l_scr, acc_scr):
    ki = pl.program_id(2)
    cdt = q_ref.dtype                         # bf16 MXU operands, f32 accumulation

    @pl.when(ki == 0)
    def _init():
        m_scr[...] = jnp.full(m_scr.shape, -jnp.inf, dtype=jnp.float32)
        l_scr[...] = jnp.zeros(l_scr.shape, dtype=jnp.float32)
        acc_scr[...] = jnp.zeros(acc_scr.shape, dtype=jnp.float32)

    # scores = q . k, contracting the (padded, lane-dense) feature axis.
    # q already carries the 1/sqrt(D) scale; padded feature columns are zero.
    s = lax.dot_general(q_ref[...], k_ref[...],
                        dimension_numbers=(((1,), (1,)), ((), ())),
                        preferred_element_type=jnp.float32)      # (tq, tk)

    # Online (flash) softmax update.  Elementwise math kept in f32 (v5e has no
    # bf16 VPU/EUP datapath).
    # TODO(synk): on v6e/v7x with D<128 the EUP exp is the binding slot; a
    # bf16 exp (or folding heads so the contraction reaches >=128) would move
    # the bottleneck back to the MXU.
    m_new = jnp.maximum(m_scr[...], jnp.max(s, axis=-1, keepdims=True))
    alpha = jnp.exp(m_scr[...] - m_new)
    p = jnp.exp(s - m_new)
    l_scr[...] = alpha * l_scr[...] + jnp.sum(p, axis=-1, keepdims=True)
    acc_scr[...] = alpha * acc_scr[...] + jnp.dot(
        p.astype(cdt), v_ref[...], preferred_element_type=jnp.float32)
    m_scr[...] = m_new

    @pl.when(ki == pl.num_programs(2) - 1)
    def _finalize():
        inv_l = pl.reciprocal(l_scr[...], approx=True)   # EUP vrcp, ~free slot
        o_ref[...] = (acc_scr[...] * inv_l).astype(o_ref.dtype)


# ---------------------------------------------------------------------------
# Wrapper helpers.
# ---------------------------------------------------------------------------
def _round_up(x, m):
    return ((x + m - 1) // m) * m


def _pick_tile(s, target):
    """Largest tile <= target dividing s, preferring MXU-friendly multiples."""
    if s <= target:
        return s
    for align in (256, 128, 16, 8):
        for t in range(target, align - 1, -1):
            if s % t == 0 and t % align == 0:
                return t
    # TODO(synk): pad + mask ragged sequence lengths instead of odd divisors.
    return s


def _vmem_limit(est_bytes):
    """2x the estimate, floored at 32 MiB, capped with headroom under physical."""
    try:
        phys = getattr(pltpu.get_tpu_info(), "vmem_capacity_bytes",
                       128 * 1024 * 1024)
    except Exception:
        phys = 128 * 1024 * 1024
    cap = max(32 * 1024 * 1024, (phys * 3) // 4)     # headroom for compiler scratch
    return int(min(max(2 * est_bytes, 32 * 1024 * 1024), cap))


def self_attention(x, wq, bq, wk, bk, wv, bv, *, tq=None, tk=None, tm=None):
    """x: (B, S, D); wq/wk/wv: (D, D) in (in, out) layout; b*: (D,)."""
    B, S, D = x.shape
    scale = 1.0 / (D ** 0.5)
    dp = _round_up(D, 128)                    # lane-dense feature dim
    cdt = jnp.bfloat16 if x.dtype == jnp.float32 else x.dtype
    itm_c = jnp.dtype(cdt).itemsize

    if tm is None:
        tm = _pick_tile(S, 256)
    if tq is None:
        tq = _pick_tile(S, 256)
    if tk is None:
        tk = _pick_tile(S, 512)
    nm, nq, nk = S // tm, S // tq, S // tk

    # Concatenated + zero-padded QKV weight (D, 3*dp) and bias (1, 3*dp).
    # Padded output columns are zero, so padded q/k/v features stay zero and
    # cannot perturb the attention math; the score scale uses the original D.
    w_qkv = jnp.zeros((D, 3 * dp), dtype=cdt)
    w_qkv = w_qkv.at[:, 0:D].set(wq.astype(cdt))
    w_qkv = w_qkv.at[:, dp:dp + D].set(wk.astype(cdt))
    w_qkv = w_qkv.at[:, 2 * dp:2 * dp + D].set(wv.astype(cdt))
    b_qkv = jnp.zeros((1, 3 * dp), dtype=jnp.float32)
    b_qkv = b_qkv.at[:, 0:D].set(bq.astype(jnp.float32))
    b_qkv = b_qkv.at[:, dp:dp + D].set(bk.astype(jnp.float32))
    b_qkv = b_qkv.at[:, 2 * dp:2 * dp + D].set(bv.astype(jnp.float32))

    # --- QKV projection: runs the GEMM once per (batch, seq-tile). ----------
    proj_est = (2 * tm * D * x.dtype.itemsize              # x tiles (x2 buffers)
                + 2 * D * 3 * dp * itm_c + 2 * 3 * dp * 4  # weights + bias
                + 2 * 3 * tm * dp * itm_c                  # q/k/v out tiles
                + tm * 3 * dp * 4)                         # f32 GEMM temporary
    q, k, v = pl.pallas_call(
        functools.partial(_qkv_proj_kernel, scale=scale, dp=dp),
        out_shape=(jax.ShapeDtypeStruct((B, S, dp), cdt),) * 3,
        grid_spec=pltpu.PrefetchScalarGridSpec(
            num_scalar_prefetch=0,
            grid=(B, nm),
            in_specs=[
                pl.BlockSpec((None, tm, D), lambda b, i: (b, i, 0)),
                # TODO(synk): on v7x pass pipeline_mode=pl.Buffered(1) for the
                # constant-index weight/bias blocks to avoid a wasted second
                # VMEM buffer at large D.
                pl.BlockSpec((D, 3 * dp), lambda b, i: (0, 0)),
                pl.BlockSpec((1, 3 * dp), lambda b, i: (0, 0)),
            ],
            out_specs=[pl.BlockSpec((None, tm, dp), lambda b, i: (b, i, 0))] * 3,
        ),
        compiler_params=pltpu.CompilerParams(
            dimension_semantics=("parallel", "parallel"),
            vmem_limit_bytes=_vmem_limit(proj_est)),
    )(x, w_qkv, b_qkv)

    # --- Flash attention over pre-projected q/k/v. ---------------------------
    # (On v7x the two leading "parallel" axes give B*nq programs to shard
    # across the 2 TensorCores; B=2 here keeps them balanced.)
    flash_est = (2 * (tq + 2 * tk) * dp * itm_c            # q/k/v tiles (x2 bufs)
                 + 2 * tq * dp * x.dtype.itemsize          # out tiles
                 + (tq * dp + 2 * tq) * 4                  # acc/m/l scratch
                 + 2 * tq * tk * 4)                        # f32 s/p temporaries
    out = pl.pallas_call(
        _flash_attn_kernel,
        out_shape=jax.ShapeDtypeStruct((B, S, dp), x.dtype),
        grid_spec=pltpu.PrefetchScalarGridSpec(
            num_scalar_prefetch=0,
            grid=(B, nq, nk),
            in_specs=[
                pl.BlockSpec((None, tq, dp), lambda b, qi, ki: (b, qi, 0)),
                pl.BlockSpec((None, tk, dp), lambda b, qi, ki: (b, ki, 0)),
                pl.BlockSpec((None, tk, dp), lambda b, qi, ki: (b, ki, 0)),
            ],
            out_specs=pl.BlockSpec((None, tq, dp), lambda b, qi, ki: (b, qi, 0)),
            scratch_shapes=[
                pltpu.VMEM((tq, 1), jnp.float32),    # running max m
                pltpu.VMEM((tq, 1), jnp.float32),    # running denom l
                pltpu.VMEM((tq, dp), jnp.float32),   # output accumulator
            ],
        ),
        compiler_params=pltpu.CompilerParams(
            dimension_semantics=("parallel", "parallel", "arbitrary"),
            vmem_limit_bytes=_vmem_limit(flash_est)),
    )(q, k, v)

    return out if dp == D else out[..., :D]


# ---------------------------------------------------------------------------
# Reference + test harness.
# ---------------------------------------------------------------------------
def _reference(x, wq, bq, wk, bk, wv, bv):
    q = x @ wq + bq
    k = x @ wk + bk
    v = x @ wv + bv
    scores = jnp.einsum("bsd,btd->bst", q, k) / (x.shape[-1] ** 0.5)
    attn = jax.nn.softmax(scores, axis=-1)
    return jnp.einsum("bst,btd->bsd", attn, v)


def _make_inputs(key, B, S, D):
    kx, kwq, kbq, kwk, kbk, kwv, kbv = jax.random.split(key, 7)
    x = jax.random.normal(kx, (B, S, D), dtype=jnp.float32)
    bound = 1.0 / (D ** 0.5)
    # Stored directly in the (in, out) layout used by the kernel.
    wq = jax.random.uniform(kwq, (D, D), minval=-bound, maxval=bound, dtype=jnp.float32)
    wk = jax.random.uniform(kwk, (D, D), minval=-bound, maxval=bound, dtype=jnp.float32)
    wv = jax.random.uniform(kwv, (D, D), minval=-bound, maxval=bound, dtype=jnp.float32)
    bq = jax.random.uniform(kbq, (D,), minval=-bound, maxval=bound, dtype=jnp.float32)
    bk = jax.random.uniform(kbk, (D,), minval=-bound, maxval=bound, dtype=jnp.float32)
    bv = jax.random.uniform(kbv, (D,), minval=-bound, maxval=bound, dtype=jnp.float32)
    return x, wq, bq, wk, bk, wv, bv


if __name__ == "__main__":
    key = jax.random.PRNGKey(0)
    k1, k2 = jax.random.split(key, 2)

    # Small shape consistent with the module (single q/kv tile).
    B, S, D = 2, 8, 32
    args = _make_inputs(k1, B, S, D)
    out = jax.block_until_ready(self_attention(*args))
    ref = _reference(*args)
    assert out.shape == (B, S, D)
    assert jnp.allclose(out, ref, atol=2e-2, rtol=2e-2), "mismatch (small case)"

    # Larger case with explicit small tiles to exercise the online-softmax
    # accumulation across multiple q and kv grid steps.
    B2, S2, D2 = 2, 64, 32
    args2 = _make_inputs(k2, B2, S2, D2)
    out2 = jax.block_until_ready(self_attention(*args2, tq=8, tk=16, tm=16))
    ref2 = _reference(*args2)
    assert out2.shape == (B2, S2, D2)
    assert jnp.allclose(out2, ref2, atol=2e-2, rtol=2e-2), "mismatch (tiled case)"

    print("KERNEL_OK")
</pallas_src>

<mosaic_0001>
module attributes {stable_mosaic.version = 11 : i64} {
  func.func @_qkv_proj_kernel(%arg0: i32, %arg1: i32, %arg2: memref<1x8x32xf32, #tpu.memory_space<vmem>>, %arg3: memref<32x384xbf16, #tpu.memory_space<vmem>>, %arg4: memref<1x384xf32, #tpu.memory_space<vmem>>, %arg5: memref<1x8x128xbf16, #tpu.memory_space<vmem>>, %arg6: memref<1x8x128xbf16, #tpu.memory_space<vmem>>, %arg7: memref<1x8x128xbf16, #tpu.memory_space<vmem>>) attributes {dimension_semantics = [#tpu.dimension_semantics<parallel>, #tpu.dimension_semantics<parallel>], iteration_bounds = array<i64: 2, 1>, scalar_prefetch = 0 : i64, scratch_operands = 0 : i64, tpu.core_type = #tpu.core_type<tc>, window_params = [{transform_indices = @transform_0, window_bounds = array<i64: 1, 8, 32>}, {pipeline_mode = #tpu.pipeline_mode<synchronous>, transform_indices = @transform_1, window_bounds = array<i64: 32, 384>}, {pipeline_mode = #tpu.pipeline_mode<synchronous>, transform_indices = @transform_2, window_bounds = array<i64: 1, 384>}, {transform_indices = @transform_3, window_bounds = array<i64: 1, 8, 128>}, {transform_indices = @transform_4, window_bounds = array<i64: 1, 8, 128>}, {transform_indices = @transform_5, window_bounds = array<i64: 1, 8, 128>}]} {
    %c0 = arith.constant 0 : index
    %c0_0 = arith.constant 0 : index
    %c0_1 = arith.constant 0 : index
    %0 = vector.load %arg2[%c0, %c0_0, %c0_1] : memref<1x8x32xf32, #tpu.memory_space<vmem>>, vector<1x8x32xf32>
    %1 = vector.shape_cast %0 : vector<1x8x32xf32> to vector<8x32xf32>
    %2 = arith.truncf %1 : vector<8x32xf32> to vector<8x32xbf16>
    %c0_2 = arith.constant 0 : index
    %c0_3 = arith.constant 0 : index
    %3 = vector.load %arg3[%c0_2, %c0_3] : memref<32x384xbf16, #tpu.memory_space<vmem>>, vector<32x384xbf16>
    %cst = arith.constant dense<0.000000e+00> : vector<8x384xf32>
    %4 = tpu.matmul %2, %3, %cst {dimension_numbers = #tpu.dot_dimension_numbers<[1], [0], [0], [1], [0, 0, 1, 1], [], []>} : vector<8x32xbf16>, vector<32x384xbf16>, vector<8x384xf32> -> vector<8x384xf32>
    %c0_4 = arith.constant 0 : index
    %c0_5 = arith.constant 0 : index
    %5 = vector.load %arg4[%c0_4, %c0_5] : memref<1x384xf32, #tpu.memory_space<vmem>>, vector<1x384xf32>
    %6 = vector.broadcast %5 : vector<1x384xf32> to vector<8x384xf32>
    %7 = arith.addf %4, %6 : vector<8x384xf32>
    %8 = vector.extract_strided_slice %7 {offsets = [0, 0], sizes = [8, 128], strides = [1, 1]} : vector<8x384xf32> to vector<8x128xf32>
    %cst_6 = arith.constant 0.176776692 : f32
    %9 = vector.broadcast %cst_6 : f32 to vector<8x128xf32>
    %10 = arith.mulf %8, %9 : vector<8x128xf32>
    %11 = arith.truncf %10 : vector<8x128xf32> to vector<8x128xbf16>
    %c0_7 = arith.constant 0 : index
    %c0_8 = arith.constant 0 : index
    %c0_9 = arith.constant 0 : index
    %12 = vector.load %arg5[%c0_7, %c0_8, %c0_9] : memref<1x8x128xbf16, #tpu.memory_space<vmem>>, vector<1x8x128xbf16>
    %13 = vector.shape_cast %12 : vector<1x8x128xbf16> to vector<8x128xbf16>
    %14 = vector.shape_cast %11 : vector<8x128xbf16> to vector<1x8x128xbf16>
    tpu.vector_store %arg5[%c0_7, %c0_8, %c0_9], %14 {strides = array<i32>} : memref<1x8x128xbf16, #tpu.memory_space<vmem>>, vector<1x8x128xbf16>,
    %15 = vector.extract_strided_slice %7 {offsets = [0, 128], sizes = [8, 128], strides = [1, 1]} : vector<8x384xf32> to vector<8x128xf32>
    %16 = arith.truncf %15 : vector<8x128xf32> to vector<8x128xbf16>
    %c0_10 = arith.constant 0 : index
    %c0_11 = arith.constant 0 : index
    %c0_12 = arith.constant 0 : index
    %17 = vector.load %arg6[%c0_10, %c0_11, %c0_12] : memref<1x8x128xbf16, #tpu.memory_space<vmem>>, vector<1x8x128xbf16>
    %18 = vector.shape_cast %17 : vector<1x8x128xbf16> to vector<8x128xbf16>
    %19 = vector.shape_cast %16 : vector<8x128xbf16> to vector<1x8x128xbf16>
    tpu.vector_store %arg6[%c0_10, %c0_11, %c0_12], %19 {strides = array<i32>} : memref<1x8x128xbf16, #tpu.memory_space<vmem>>, vector<1x8x128xbf16>,
    %20 = vector.extract_strided_slice %7 {offsets = [0, 256], sizes = [8, 128], strides = [1, 1]} : vector<8x384xf32> to vector<8x128xf32>
    %21 = arith.truncf %20 : vector<8x128xf32> to vector<8x128xbf16>
    %c0_13 = arith.constant 0 : index
    %c0_14 = arith.constant 0 : index
    %c0_15 = arith.constant 0 : index
    %22 = vector.load %arg7[%c0_13, %c0_14, %c0_15] : memref<1x8x128xbf16, #tpu.memory_space<vmem>>, vector<1x8x128xbf16>
    %23 = vector.shape_cast %22 : vector<1x8x128xbf16> to vector<8x128xbf16>
    %24 = vector.shape_cast %21 : vector<8x128xbf16> to vector<1x8x128xbf16>
    tpu.vector_store %arg7[%c0_13, %c0_14, %c0_15], %24 {strides = array<i32>} : memref<1x8x128xbf16, #tpu.memory_space<vmem>>, vector<1x8x128xbf16>,
    return
  }
  func.func @transform_0(%arg0: i32, %arg1: i32) -> (i32, i32, i32) {
    %c0_i32 = arith.constant 0 : i32
    %c0_i32_0 = arith.constant 0 : i32
    return %arg0, %arg1, %c0_i32 : i32, i32, i32
  }
  func.func @transform_1(%arg0: i32, %arg1: i32) -> (i32, i32) {
    %c0_i32 = arith.constant 0 : i32
    %c0_i32_0 = arith.constant 0 : i32
    %c0_i32_1 = arith.constant 0 : i32
    return %c0_i32, %c0_i32_0 : i32, i32
  }
  func.func @transform_2(%arg0: i32, %arg1: i32) -> (i32, i32) {
    %c0_i32 = arith.constant 0 : i32
    %c0_i32_0 = arith.constant 0 : i32
    %c0_i32_1 = arith.constant 0 : i32
    return %c0_i32, %c0_i32_0 : i32, i32
  }
  func.func @transform_3(%arg0: i32, %arg1: i32) -> (i32, i32, i32) {
    %c0_i32 = arith.constant 0 : i32
    %c0_i32_0 = arith.constant 0 : i32
    return %arg0, %arg1, %c0_i32 : i32, i32, i32
  }
  func.func @transform_4(%arg0: i32, %arg1: i32) -> (i32, i32, i32) {
    %c0_i32 = arith.constant 0 : i32
    %c0_i32_0 = arith.constant 0 : i32
    return %arg0, %arg1, %c0_i32 : i32, i32, i32
  }
  func.func @transform_5(%arg0: i32, %arg1: i32) -> (i32, i32, i32) {
    %c0_i32 = arith.constant 0 : i32
    %c0_i32_0 = arith.constant 0 : i32
    return %arg0, %arg1, %c0_i32 : i32, i32, i32
  }
}

</mosaic_0001>

<bundles_post_ra>
// kernel: tpu_custom_call.1
= control target key start
LH: loop header
LB: loop body
LE: loop exit
PB: predicated region body
PF: predicated region fallthrough
CT: control target
= control target key end

     0   :  { %s1324_s0 = inlined_call_operand.hbm [shape: f32[2,8,32], index: 0, kind: input, shape index: {}]   ;;  %s1325_s1 = inlined_call_operand.hbm [shape: bf16[32,384], index: 1, kind: input, shape index: {}]   ;;  %s1326_s2 = inlined_call_operand.vmem [shape: f32[1,384], index: 2, kind: input, shape index: {}]   ;;  %s1327_s3 = inlined_call_operand.hbm [shape: bf16[2,8,128], index: 3, kind: output, shape index: {0}]   ;;  %s1328_s4 = inlined_call_operand.hbm [shape: bf16[2,8,128], index: 4, kind: output, shape index: {1}]   ;;  %s1329_s5 = inlined_call_operand.hbm [shape: bf16[2,8,128], index: 5, kind: output, shape index: {2}]  }
   0x1   :  { %1335 = sst [smem:[#allocation15_spill]] %s1324_s0 }
   0x2   :  { %1336 = sst [smem:[#allocation16_spill]] %s1325_s1 }
   0x3   :  { %1337 = sst [smem:[#allocation17_spill]] %s1326_s2 }
   0x4   :  { %11 = vsyncpa [#allocation3], 0 }
   0x5   :  { %13 = vsyncpa [#allocation3 + $0x1], 0 }
   0x6   :  { %14 = vsyncpa [#allocation6], 0 }
   0x7   :  { %15 = vsyncpa [#allocation4], 0 }
   0x8   :  { %17 = vsyncpa [#allocation4 + $0x1], 0 }
   0x9   :  { %18 = vsyncpa [#allocation9], 0 }
   0xa   :  { %20 = vsyncpa [#allocation9 + $0x1], 0  ;;  %s1034_s18 = smov 0   ;;  %s1036_s19 = smov 0  }
   0xb   :  { %s1038_s20 = smov 0   ;;  %s1040_s21 = smov 0  }
   0xc   :  { %s1042_s22 = smov 0   ;;  %s1044_s23 = smov 0  }
   0xd LB: > { %s1065_s24 = sadd.s32 4294967295, %s992_s23   ;;  %s1333_s25 = sadd.s32 4294967294, %s992_s23   ;;  %s992_s23 = sphi %s1044_s23, %s26_s23   ;;  %s988_s22 = sphi %s1042_s22, %s1362_s22   ;;  %s984_s21 = sphi %s1040_s21, %s1361_s21   ;;  %s980_s20 = sphi %s1038_s20, %s1360_s20   ;;  %s976_s19 = sphi %s1036_s19, %s1359_s19   ;;  %s972_s18 = sphi %s1034_s18, %s1358_s18  }
   0xe   : > { %p60_p0 = scmp.ne.s32.totalorder %s976_s19, %s972_s18  ;;  %p1330_p1 = scmp.eq.s32.totalorder %s1065_s24, 0 }
   0xf   : > { %p134_p3 = scmp.eq.s32.totalorder %s1333_s25, 1  ;;  %p654_p5 = scmp.ge.s32.totalorder %s992_s23, 1 }
  0x10   : > { %p1076_p4 = por %p1330_p1, %p60_p0  ;;  %p197_p7 = scmp.lt.s32.totalorder %s992_s23, 3 }
  0x11   : > { %p1081_p6 = por %p134_p3, %p60_p0  ;;  %s994_s29 = smov [#allocation5]  }
  0x12   : > { %s1338_s26 = scalar_select %p1076_p4, 1, 0 }
  0x13   : > { %s1339_s27 = scalar_select %p1081_p6, 1, 0 }
  0x14   : > { %p1086_p8 = pnand %p654_p5, %p197_p7  ;;  %s209_s30 = sshll.u32 %s994_s29, 4  ;;  %s210_s30 = int_to_ptr.vmem [resolvable:$true] %s209_s30 }
  0x15   : > { %s38_s7 = sadd.s32 1, %s988_s22  ;;  %s1342_s1 = sld [smem:[#allocation16_spill]] }
  0x16   : > { %s1340_s28 = scalar_select %p1086_p8, 1, 0 }
  0x17   : > { %p704_p9 = pneg %p1086_p8 }
  0x19   : > { %p1095_p11 = pnand %p704_p9, %p1330_p1 }
  0x1b   : > { %s788_s10 = scalar_lea.hbm %s1342_s1, 768  ;;  %p790_p13 = pneg %p1095_p11 }
  0x1c   : > { %p789_p12 = scmp.ne.s32.totalorder %s1342_s1, %s788_s10  ;;  %p795_p5 = scmp.lt.u32.totalorder %s788_s10, %s1342_s1 }
  0x1e   : > { %p791_p0 = pnand %p790_p13, %p789_p12 }
  0x20   : > { %p792_p3 = pneg %p791_p0 }
  0x22   : > { %p797_p7 = pnand %p795_p5, %p792_p3 }
  0x24   : > { %800 = shalt.err (!%p797_p7)
}
  0x25   : > { %s801_s15 = scalar_lea.vmem %s210_s30, 768  ;;  %p809_p2 = scmp.lt.s32.totalorder %s210_s30, %s210_s30 }
  0x26   : > { %p802_p9 = scmp.ne.s32.totalorder %s210_s30, %s801_s15  ;;  %p810_p6 = scmp.lt.s32.totalorder %s801_s15, %s801_s15 }
  0x28   : > { %p804_p10 = pnand %p802_p9, %p790_p13  ;;  %p811_p4 = por %p810_p6, %p809_p2 }
  0x2a   : > { %p805_p1 = pneg %p804_p10 }
  0x2c   : > { %p812_p8 = pnand %p811_p4, %p805_p1 }
  0x2e   : > { %815 = shalt.err (!%p812_p8)
}
  0x2f   : > { %s995_s16 = smov 192   ;;  %s996_s17 = smov 12  }
  0x30   : > { %707 = dma.hbm_to_vmem [thread:$0]  (!%p1095_p11), %s1342_s1, 768, %s210_s30, [#allocation6], %s995_s16, %s995_s16, %s996_s17  }
  0x31   : > { %p40_p1 = scmp.ge.s32.totalorder %s38_s7, 2  ;;  %s47_s9 = sadd.s32 1, %s980_s20 }
  0x32   : > { %p54_p2 = scmp.ne.s32.totalorder %s980_s20, %s976_s19  ;;  %p55_p4 = scmp.eq.s32.totalorder %s992_s23, 0 }
  0x33   : > { %s1364_s7 = smov (%p40_p1, %s38_s7), 0  ;;  %p1344_p8 = scmp.eq.s32.totalorder %s1065_s24, 1 }
  0x34   : > { %p1122_p6 = por %p55_p4, %p54_p2  ;;  %s42_s6 = ssub.s32 %s988_s22, %s1364_s7 }
  0x35   : > { %p1128_p10 = por %p1344_p8, %p54_p2  ;;  %p723_p12 = scmp.lt.s32.totalorder %s992_s23, 2 }
  0x36   : > { %p45_p11 = scmp.eq.s32.totalorder %s42_s6, 0  ;;  %s226_s30 = sand.u32 1, %s980_s20  }
  0x37   : > { %s657_s12 = sshll.u32 %s226_s30, 3  ;;  %s658_s14 = sshll.u32 %s988_s22, 7 }
  0x38   : > { %s1137_s13 = scalar_select %p45_p11, %s980_s20, %s47_s9  }
  0x39   : > { %s1346_s0 = sld [smem:[#allocation15_spill]]  ;;  %s230_s29 = scalar_lea.vmem [#allocation2], %s657_s12 }
  0x3a   : > { %s238_s8 = sshll.u32 %s230_s29, 4  ;;  %p1149_p13 = pnand %p723_p12, %p1122_p6  ;;  %s1145_s8 = int_to_ptr.vmem [resolvable:$true] %s238_s8 }
  0x3b   : > { %s227_s9 = scalar_lea.sflag [#allocation3], %s226_s30 }
  0x3c   : > { %p818_p3 = pneg %p1149_p13 }
  0x3f   : > { %s1143_s17 = scalar_lea.hbm %s1346_s0, %s658_s14  ;;  %s821_s15 = scalar_lea.hbm %s1346_s0, 256 }
  0x40   : > { %s816_s25 = scalar_lea.hbm %s1143_s17, 128  ;;  %p822_p9 = scmp.lt.u32.totalorder %s1143_s17, %s1346_s0 }
  0x41   : > { %p817_p0 = scmp.ne.s32.totalorder %s1143_s17, %s816_s25  ;;  %p823_p1 = scmp.lt.u32.totalorder %s821_s15, %s816_s25 }
  0x42   : > { %p825_p4 = scmp.lt.u32.totalorder %s816_s25, %s1143_s17 }
  0x43   : > { %p819_p5 = pnand %p818_p3, %p817_p0  ;;  %p824_p2 = por %p823_p1, %p822_p9 }
  0x45   : > { %p820_p7 = pneg %p819_p5  ;;  %p826_p6 = por %p825_p4, %p824_p2 }
  0x47   : > { %p827_p8 = pnand %p826_p6, %p820_p7 }
  0x49   : > { %830 = shalt.err (!%p827_p8)
}
  0x4a   : > { %s831_s30 = scalar_lea.vmem %s1145_s8, 128  ;;  %s997_s29 = smov [#allocation2]  }
  0x4b   : > { %p832_p12 = scmp.ne.s32.totalorder %s1145_s8, %s831_s30  ;;  %s836_s12 = sshll.u32 %s997_s29, 4  ;;  %s837_s12 = int_to_ptr.vmem [resolvable:$false] %s836_s12 }
  0x4c   : > { %s838_s14 = scalar_lea.vmem %s837_s12, 256  ;;  %p839_p5 = scmp.lt.s32.totalorder %s1145_s8, %s837_s12 }
  0x4d   : > { %p834_p11 = pnand %p832_p12, %p818_p3  ;;  %p840_p9 = scmp.lt.s32.totalorder %s838_s14, %s831_s30 }
  0x4f   : > { %p835_p0 = pneg %p834_p11  ;;  %p841_p1 = por %p840_p9, %p839_p5 }
  0x51   : > { %p842_p2 = pnand %p841_p1, %p835_p0 }
  0x53   : > { %845 = shalt.err (!%p842_p2)
}
  0x54   : > { %711 = dma.hbm_to_vmem [thread:$0]  (!%p1149_p13), %s1143_s17, 128, %s1145_s8, %s227_s9  }
  0x55   : > { %p1348_p7 = scmp.ne.s32.totalorder %s1340_s28, 0 }
  0x56   : > { %s1181_s25 = sand.u32 (!%p1348_p7), 1, %s976_s19   ;;  %p1349_p3 = scmp.ne.s32.totalorder (!%p1348_p7), %s1338_s26, 0 }
  0x57   : > { %247 = sbr.rel (%p1348_p7) target bundleno = 384 (0x180), region = 32  ;;  %s660_s15 = sshll.u32 (!%p1348_p7), %s1181_s25, 3 }
  0x58   : > { %s250_s10 = scalar_lea.sflag (!%p1348_p7), [#allocation3], %s1181_s25  ;;  %s253_s16 = scalar_lea.vmem (!%p1348_p7), [#allocation2], %s660_s15 }
  0x5e   : > { %955 = dma.done.wait (%p1349_p3), %s250_s10, 128  }
  0x5f   : > { %957 = vsyncadd (%p1349_p3), %s250_s10, 4294967168  ;;  %p1350_p4 = scmp.eq.s32.totalorder %s1065_s24, 0 }
  0x61   : > { %959 = dma.done.wait (%p1350_p4), [#allocation6], 768   ;;  %p1351_p13 = pmov %p1350_p4 }
  0x62   : > { %v998_v0 = vmov 0.0   ;;  %vm999_vm0 = vmmov 0   ;;  %v1000_v1 = vmov 0   ;;  %v780_v2 = vld [vmem:[#allocation5 + $0x4] ss:$12 sps:$4 sm:$0xff]   ;;  %vm354_vm1 = vcmask 261120  }
  0x63   : > { %961 = vsyncadd (%p1351_p13), [#allocation6], 4294966528  ;;  %684 = vmatprep.subr.bf16.mxu1 %v998_v0  ;;  %688 = vmatprep.mubr.msk.bf16.mxu1 %vm999_vm0, %v998_v0  ;;  %v782_v3 = vld [vmem:[#allocation5 + $0x8] ss:$12 sps:$4 sm:$0xff]   ;;  %v783_v4 = vld [vmem:[#allocation5] ss:$12 sps:$4 sm:$0xff]   ;;  %v307_v10 = vlaneseq }
  0x64   : > { %390 = vmatprep.mubr.bf16.mxu0 %v1000_v1  ;;  %358 = vmatprep.subr.bf16.mxu0 %v780_v2  ;;  %v784_v5 = vld [vmem:[#allocation5 + $0x1c] ss:$12 sps:$4 sm:$0xff]   ;;  %v786_v6 = vld [vmem:[#allocation5 + $0x20] ss:$12 sps:$4 sm:$0xff]   ;;  %v787_v7 = vld [vmem:[#allocation5 + $0x18] ss:$12 sps:$4 sm:$0xff]  }
  0x65   : > { %685 = vmatpush3.bf16.msra.mxu1 %v782_v3  ;;  %359 = vmatpush1.bf16.msra.mxu0 %v783_v4  ;;  %v295_v8 = vld [vmem:[%s253_s16] sm:$0xff]  ;;  %v308_v11 = vshrl.u32 %v307_v10, 7  ;;  %s1352_s2 = sld [smem:[#allocation17_spill]]  ;;  %s1197_s17 = sshll.u32 %s1181_s25, 2 }
  0x66   : > { %686 = vmatprep.subr.bf16.mxu1 %v998_v0  ;;  %360 = vmatprep.subr.bf16.mxu0 %v784_v5  ;;  %v296_v9 = vpack.c.bf16 %v295_v8, %v295_v8  ;;  %s676_s6 = sshll.u32 %s984_s21, 6  ;;  %s286_s9 = scalar_lea.vmem [#allocation8], %s1197_s17 }
  0x67   : > { %v317_v12 = vsub.s32 2, %v308_v11  ;;  %v309_v13 = vsub.s32 0, %v308_v11  ;;  %v313_v15 = vsub.s32 1, %v308_v11  ;;  %s485_s30 = sshll.u32 %s286_s9, 4  ;;  %s1334_s29 = scalar_lea.vmem [#allocation7], %s1197_s17  ;;  %s1211_s30 = int_to_ptr.vmem [resolvable:$true] %s485_s30 }
  0x68   : > { %s471_s12 = sshll.u32 %s1334_s29, 4  ;;  %s1208_s21 = scalar_lea.hbm %s1328_s4, %s676_s6  ;;  %s1218_s12 = int_to_ptr.vmem [resolvable:$true] %s471_s12 }
  0x69   : > { %687 = vmatpush3.bf16.msra.mxu1 %v786_v6  ;;  %361 = vmatpush1.bf16.msra.mxu0 %v787_v7  ;;  %s293_s10 = scalar_lea.vmem [#allocation10], %s1197_s17  ;;  %s1216_s29 = scalar_lea.hbm %s1327_s3, %s676_s6 }
  0x6a   : > { %s499_s16 = sshll.u32 %s293_s10, 4  ;;  %s1223_s8 = scalar_lea.hbm %s1329_s5, %s676_s6  ;;  %s1225_s16 = int_to_ptr.vmem [resolvable:$true] %s499_s16 }
  0x6b   : > { %v305_v14 = vld [vmem:[%s1352_s2] sm:$0x7]  ;;  %s846_s1 = scalar_lea.vmem %s1211_s30, 64  ;;  %s1001_s26 = smov [#allocation8]  }
  0x6c   : > { %689 = vmatmul.mubr.msk.bf16.vlgmr.msra.gmra.mrb[0].mxu1 %vm354_vm1, %v296_v9  ;;  %671 = vmatmul.mubr.msk.bf16.vlgmr.msra.gmra.mrb[0].mxu0 %vm354_vm1, %v296_v9  ;;  %v318_v16 = vrot.slane %v305_v14, %v317_v12  ;;  %v310_v17 = vrot.slane %v305_v14, %v309_v13  ;;  %v314_v18 = vrot.slane %v305_v14, %v313_v15  ;;  %p847_p6 = scmp.ne.s32.totalorder %s1211_s30, %s846_s1  ;;  %s850_s28 = sshll.u32 %s1001_s26, 4  ;;  %s851_s28 = int_to_ptr.vmem [resolvable:$false] %s850_s28 }
  0x6d   : > { %s852_s2 = scalar_lea.vmem %s851_s28, 128  ;;  %p853_p11 = scmp.lt.s32.totalorder %s1211_s30, %s851_s28 }
  0x6e   : > { %p848_p8 = pnand %p847_p6, %p1128_p10  ;;  %p854_p0 = scmp.lt.s32.totalorder %s852_s2, %s846_s1 }
  0x70   : > { %p849_p12 = pneg %p848_p8  ;;  %p855_p5 = por %p854_p0, %p853_p11 }
  0x72   : > { %p856_p9 = pnand %p855_p5, %p849_p12 }
 0x13f   : > { %v433_v19 = vpop.f32.mrb[0].mxu1  ;;  %v392_v21 = vpop.f32.mrb[0].mxu0 }
 0x140   : > { %v434_v20 = vadd.f32 %v433_v19, %v318_v16  ;;  %v690_v22 = vpop.f32.mrb[1].mxu1  ;;  %v393_v23 = vadd.f32 %v392_v21, %v310_v17  ;;  %v394_v24 = vpop.f32.mrb[1].mxu0 }
 0x141   : > { %v436_v25 = vpop.f32.mrb[2].mxu1  ;;  %v395_v27 = vadd.f32 %v394_v24, %v314_v18  ;;  %v396_v28 = vpop.f32.mrb[2].mxu0 }
 0x142   : > { %v444_v26 = vpack.c.bf16 %v434_v20, %v434_v20  ;;  %v691_v29 = vpop.f32.mrb[3].mxu1  ;;  %v439_v30 = vmul.f32 0.17677669, %v393_v23  ;;  %v397_v31 = vpop.f32.mrb[3].mxu0 }
 0x143   : > { %v442_v32 = vpack.c.bf16 %v395_v27, %v395_v27 }
 0x144   : > { %445 = vst [vmem:[%s293_s10] sm:$0xf] %v444_v26  ;;  %v440_v33 = vpack.c.bf16 %v439_v30, %v439_v30  ;;  %s1353_s10 = sand.u32 1, %s1065_s24  }
 0x145   : > { %443 = vst [vmem:[%s286_s9] sm:$0xf] %v442_v32  ;;  %s1229_s0 = scalar_lea.sflag [#allocation9], %s1353_s10 }
 0x146   : > { %859 = shalt.err (!%p856_p9)
}
 0x147   : > { %s860_s24 = scalar_lea.hbm %s1208_s21, 64  ;;  %s864_s14 = scalar_lea.hbm %s1328_s4, 128 }
 0x148   : > { %p861_p1 = scmp.ne.s32.totalorder %s1208_s21, %s860_s24  ;;  %p865_p3 = scmp.lt.u32.totalorder %s1208_s21, %s1328_s4 }
 0x149   : > { %p866_p4 = scmp.lt.u32.totalorder %s864_s14, %s860_s24  ;;  %p868_p6 = scmp.lt.u32.totalorder %s860_s24, %s1208_s21 }
 0x14a   : > { %p862_p2 = pnand %p861_p1, %p1128_p10 }
 0x14b   : > { %p867_p13 = por %p866_p4, %p865_p3 }
 0x14c   : > { %p863_p7 = pneg %p862_p2 }
 0x14d   : > { %p869_p8 = por %p868_p6, %p867_p13 }
 0x14f   : > { %p870_p12 = pnand %p869_p8, %p863_p7 }
 0x151   : > { %873 = shalt.err (!%p870_p12)
}
 0x152   : > { %699 = dma.vmem_to_hbm [thread:$0]  (%p1128_p10), %s1211_s30, 64, %s1208_s21, %s1229_s0  }
 0x153   : > { %s1354_s1 = scalar_lea.vmem [#allocation7], %s1197_s17  ;;  %s447_s2 = scalar_lea.sflag [#allocation4], %s1181_s25 }
 0x154   : > { %441 = vst [vmem:[%s1354_s1] sm:$0xf] %v440_v33  ;;  %s874_s26 = scalar_lea.vmem %s1218_s12, 64  ;;  %s1002_s28 = smov [#allocation7]  }
 0x155   : > { %p875_p11 = scmp.ne.s32.totalorder %s1218_s12, %s874_s26  ;;  %s878_s24 = sshll.u32 %s1002_s28, 4  ;;  %s879_s24 = int_to_ptr.vmem [resolvable:$false] %s878_s24 }
 0x156   : > { %s880_s6 = scalar_lea.vmem %s879_s24, 128  ;;  %p881_p9 = scmp.lt.s32.totalorder %s1218_s12, %s879_s24 }
 0x157   : > { %p876_p0 = pnand %p875_p11, %p1128_p10  ;;  %p882_p1 = scmp.lt.s32.totalorder %s880_s6, %s874_s26 }
 0x159   : > { %p877_p5 = pneg %p876_p0  ;;  %p883_p2 = por %p882_p1, %p881_p9 }
 0x15b   : > { %p884_p7 = pnand %p883_p2, %p877_p5 }
 0x15d   : > { %887 = shalt.err (!%p884_p7)
}
 0x15e   : > { %s888_s25 = scalar_lea.hbm %s1216_s29, 64  ;;  %s892_s21 = scalar_lea.hbm %s1327_s3, 128 }
 0x15f   : > { %p889_p3 = scmp.ne.s32.totalorder %s1216_s29, %s888_s25  ;;  %p893_p6 = scmp.lt.u32.totalorder %s1216_s29, %s1327_s3 }
 0x160   : > { %p894_p8 = scmp.lt.u32.totalorder %s892_s21, %s888_s25  ;;  %p896_p11 = scmp.lt.u32.totalorder %s888_s25, %s1216_s29 }
 0x161   : > { %p890_p4 = pnand %p889_p3, %p1128_p10 }
 0x162   : > { %p895_p12 = por %p894_p8, %p893_p6 }
 0x163   : > { %p891_p13 = pneg %p890_p4 }
 0x164   : > { %p897_p0 = por %p896_p11, %p895_p12 }
 0x166   : > { %p898_p5 = pnand %p897_p0, %p891_p13 }
 0x168   : > { %901 = shalt.err (!%p898_p5)
}
 0x169   : > { %698 = dma.vmem_to_hbm [thread:$0]  (%p1128_p10), %s1218_s12, 64, %s1216_s29, %s447_s2  }
 0x16a   : > { %s902_s15 = scalar_lea.vmem %s1225_s16, 64  ;;  %s1003_s10 = smov [#allocation10]  }
 0x16b   : > { %p903_p9 = scmp.ne.s32.totalorder %s1225_s16, %s902_s15  ;;  %s906_s1 = sshll.u32 %s1003_s10, 4  ;;  %s907_s1 = int_to_ptr.vmem [resolvable:$false] %s906_s1 }
 0x16c   : > { %s908_s26 = scalar_lea.vmem %s907_s1, 128  ;;  %p909_p7 = scmp.lt.s32.totalorder %s1225_s16, %s907_s1 }
 0x16d   : > { %p904_p1 = pnand %p903_p9, %p1128_p10  ;;  %p910_p3 = scmp.lt.s32.totalorder %s908_s26, %s902_s15 }
 0x16f   : > { %p905_p2 = pneg %p904_p1  ;;  %p911_p4 = por %p910_p3, %p909_p7 }
 0x171   : > { %p912_p13 = pnand %p911_p4, %p905_p2 }
 0x173   : > { %915 = shalt.err (!%p912_p13)
}
 0x174   : > { %s916_s29 = scalar_lea.hbm %s1223_s8, 64  ;;  %s920_s28 = scalar_lea.hbm %s1329_s5, 128 }
 0x175   : > { %p917_p6 = scmp.ne.s32.totalorder %s1223_s8, %s916_s29  ;;  %p921_p11 = scmp.lt.u32.totalorder %s1223_s8, %s1329_s5 }
 0x176   : > { %p922_p0 = scmp.lt.u32.totalorder %s920_s28, %s916_s29  ;;  %p924_p9 = scmp.lt.u32.totalorder %s916_s29, %s1223_s8 }
 0x177   : > { %p918_p8 = pnand %p917_p6, %p1128_p10 }
 0x178   : > { %p923_p5 = por %p922_p0, %p921_p11 }
 0x179   : > { %p919_p12 = pneg %p918_p8 }
 0x17a   : > { %p925_p1 = por %p924_p9, %p923_p5 }
 0x17c   : > { %p926_p2 = pnand %p925_p1, %p919_p12 }
 0x17e   : > { %929 = shalt.err (!%p926_p2)
}
 0x17f   : > { %700 = dma.vmem_to_hbm [thread:$0]  (%p1128_p10), %s1225_s16, 64, %s1223_s8, %s1229_s0  }
 0x180 PF: > { %s511_s25 = sand.u32 1, %s972_s18   ;;  %p1355_p7 = scmp.ne.s32.totalorder %s1339_s27, 0 }
 0x181   : > { %p1356_p3 = scmp.ge.s32.totalorder %s992_s23, 2  ;;  %s512_s17 = scalar_lea.sflag [#allocation4], %s511_s25 }
 0x183   : > { %p713_p4 = pnand %p1356_p3, %p1355_p7 }
 0x185   : > { %963 = dma.done.wait (!%p713_p4), %s512_s17, 64  }
 0x186   : > { %965 = vsyncadd (!%p713_p4), %s512_s17, 4294967232  ;;  %s1357_s30 = sadd.s32 4294967294, %s992_s23  }
 0x187   : > { %s520_s21 = sand.u32 1, %s1357_s30  }
 0x188   : > { %s521_s9 = scalar_lea.sflag [#allocation9], %s520_s21 }
 0x189   : > { %967 = dma.done.wait (!%p713_p4), %s521_s9, 128  }
 0x18a   : > { %969 = vsyncadd (!%p713_p4), %s521_s9, 4294967168  ;;  %s26_s23 = sadd.s32 1, %s992_s23   ;;  %s1358_s18 = smov %s976_s19 }
 0x18b   : > { %p23_p10 = scmp.ge.s32.totalorder %s26_s23, 4   ;;  %s1359_s19 = smov %s980_s20 }
 0x18c   : > { %s1360_s20 = smov %s1137_s13  ;;  %s1361_s21 = smov %s988_s22 }
 0x18d   : > { %s1362_s22 = smov %s1364_s7  ;;  %25 = sbr.rel (!%p23_p10) target bundleno = 13 (0xd), region = 113 }
 0x194   :  { %535 = vsyncpa [#allocation3], 1 }
 0x195   :  { %537 = vsyncpa [#allocation3 + $0x1], 1 }
 0x196   :  { %538 = vsyncpa [#allocation6], 1 }
 0x197   :  { %539 = vsyncpa [#allocation4], 1 }
 0x198   :  { %541 = vsyncpa [#allocation4 + $0x1], 1 }
 0x199   :  { %542 = vsyncpa [#allocation9], 1 }
 0x19a   :  { %544 = vsyncpa [#allocation9 + $0x1], 1 }

</bundles_post_ra>
